<compile_context>
chip_gen: v5e
topology: v5e:2x2
jax: 0.10.0
libtpu: 0.0.40
codegen_flags: <defaults>
</compile_context>

<pallas_src>
import functools

import jax
import jax.numpy as jnp
from jax.experimental import pallas as pl
from jax.experimental.pallas import tpu as pltpu

LANES = 128
SUBLANES = 8

_MIN_ROWS_PER_STEP = 256   # 32K outputs/step minimum: keeps per-step overhead small
_MIN_GRID_STEPS = 4        # give v7x's two TensorCores work + prefetch overlap


def _cdiv(a, b):
    return -(-a // b)


def _choose_block_rows(total_rows, requested_rows):
    """Pick a lane-dense block height (multiple of 8 sublane rows)."""
    br = min(requested_rows, total_rows)
    br = max(SUBLANES, br - br % SUBLANES)
    # If one block would swallow (almost) the whole batch, split it so the
    # "parallel" grid axis has a few steps (dual-TC sharding on v7x, pipeline
    # overlap), but never drop below _MIN_ROWS_PER_STEP rows per step.
    while _cdiv(total_rows, br) < _MIN_GRID_STEPS and br >= 2 * _MIN_ROWS_PER_STEP:
        br //= 2
        br = max(SUBLANES, br - br % SUBLANES)
    return max(SUBLANES, br)


def mlp_kernel(x_ref, w1_ref, b1_ref, w2_ref, b2_ref, o_ref, *,
               in_features, hidden, chunk_rows):
    # x_ref : (in_features, block_rows, 128)  VMEM  (batch on sublane x lane)
    # w1_ref: (in_features * hidden,)         SMEM  (row-major (in, hid))
    # b1_ref: (hidden,)                       SMEM
    # w2_ref: (hidden,)                       SMEM  (pre-scaled by 0.5 in wrapper)
    # b2_ref: (1,)                            SMEM  (pre-scaled by 0.5 in wrapper)
    # o_ref : (block_rows, 128)               VMEM
    block_rows = o_ref.shape[0]
    n_chunks = block_rows // chunk_rows  # static

    # Hoist every SMEM scalar read out of the loops (cheap slds, once per step).
    w1v = [[w1_ref[k * hidden + j] for k in range(in_features)]
           for j in range(hidden)]
    b1v = [b1_ref[j] for j in range(hidden)]
    w2v = [w2_ref[j] for j in range(hidden)]
    b2v = b2_ref[0]

    # Row-chunk loop keeps the live vreg set small (~3 * chunk_rows/8 vregs)
    # even when block_rows is large; x is re-read per use (vld has slack).
    @pl.loop(0, n_chunks)
    def _(c):
        r0 = pl.multiple_of(c * chunk_rows, chunk_rows)
        rs = pl.ds(r0, chunk_rows)
        z = None
        for j in range(hidden):                # static unroll: 8 hidden units
            h = x_ref[0, rs, :] * w1v[j][0]
            for k in range(1, in_features):    # static unroll: 4 input features
                h = h + x_ref[k, rs, :] * w1v[j][k]   # VPU broadcast FMA
            h = jnp.maximum(h + b1v[j], 0.0)   # bias + ReLU (no jnp.full splats)
            z = h * w2v[j] if z is None else z + h * w2v[j]
        # sigmoid(t) = 0.5 * tanh(t/2) + 0.5 ; the 1/2 is folded into w2/b2,
        # so this is exact (no approx reciprocal) and tanh runs on the EUP.
        o_ref[rs, :] = 0.5 * jnp.tanh(z + b2v) + 0.5


def neural_net_forward(x, w1, b1, w2, b2, *, block_batch=131072,
                       feature_major=False):
    """Fused Linear(4->8) -> ReLU -> Linear(8->1) -> Sigmoid. Returns (B, 1) f32.

    If `feature_major=True`, x must be given as (in_features, B); this skips the
    wrapper-side transpose HBM pass entirely (preferred for production).
    """
    if feature_major:
        in_f, B = x.shape
    else:
        B, in_f = x.shape
    hid = w1.shape[1]

    rows0 = _cdiv(B, LANES)
    block_rows = _choose_block_rows(rows0, max(1, block_batch // LANES))
    grid_n = _cdiv(rows0, block_rows)
    rows = grid_n * block_rows
    Bp = rows * LANES

    xf = x.astype(jnp.float32)
    if feature_major:
        # Already (in_f, B): pad the batch axis; the reshape below is free.
        xf = jnp.pad(xf, ((0, 0), (0, Bp - B)))
    else:
        # Natural (B, in_f) input: one fused pad+cast+transpose producer.
        # Store/feed x feature-major upstream (feature_major=True) to avoid it.
        xf = jnp.pad(xf, ((0, Bp - B), (0, 0))).T
    x3 = xf.reshape(in_f, rows, LANES)

    # Tiny parameters as flat f32 scalar tables in SMEM.  The 1/2 of the
    # tanh-form sigmoid is folded into the second layer's weights/bias here.
    w1_flat = w1.reshape(-1).astype(jnp.float32)          # (in_f * hid,)
    b1_flat = b1.reshape(-1).astype(jnp.float32)          # (hid,)
    w2_half = (0.5 * w2.reshape(-1)).astype(jnp.float32)  # (hid,)
    b2_half = (0.5 * b2.reshape(-1)).astype(jnp.float32)  # (1,)

    # Largest vreg-friendly chunk height that divides the block.
    chunk_rows = next(c for c in (64, 32, 16, 8) if block_rows % c == 0)

    kernel = functools.partial(mlp_kernel, in_features=in_f, hidden=hid,
                               chunk_rows=chunk_rows)

    o2 = pl.pallas_call(
        kernel,
        out_shape=jax.ShapeDtypeStruct((rows, LANES), jnp.float32),
        grid=(grid_n,),
        in_specs=[
            pl.BlockSpec((in_f, block_rows, LANES), lambda i: (0, i, 0)),
            pl.BlockSpec(memory_space=pltpu.MemorySpace.SMEM),
            pl.BlockSpec(memory_space=pltpu.MemorySpace.SMEM),
            pl.BlockSpec(memory_space=pltpu.MemorySpace.SMEM),
            pl.BlockSpec(memory_space=pltpu.MemorySpace.SMEM),
        ],
        out_specs=pl.BlockSpec((block_rows, LANES), lambda i: (i, 0)),
        compiler_params=pltpu.CompilerParams(
            dimension_semantics=("parallel",),  # shard batch across TCs on v7x
        ),
    )(x3, w1_flat, b1_flat, w2_half, b2_half)

    # Back to the PyTorch-facing (B, 1) shape (cheap layout plumbing in XLA).
    return o2.reshape(Bp, 1)[:B]


if __name__ == "__main__":
    key = jax.random.PRNGKey(0)
    k_x, k_w1, k_b1, k_w2, k_b2 = jax.random.split(key, 5)

    IN, HID, OUT = 4, 8, 1      # shapes implied by nn.Linear(4, 8) / nn.Linear(8, 1)
    B = 2048                    # small demo batch

    x = jax.random.normal(k_x, (B, IN), dtype=jnp.float32)

    # Deterministic parameter init (uniform, like PyTorch's default bound = 1/sqrt(fan_in)).
    bound1 = 1.0 / jnp.sqrt(IN)
    w1 = jax.random.uniform(k_w1, (IN, HID), jnp.float32, -bound1, bound1)
    b1 = jax.random.uniform(k_b1, (HID,), jnp.float32, -bound1, bound1)
    bound2 = 1.0 / jnp.sqrt(HID)
    w2 = jax.random.uniform(k_w2, (HID, OUT), jnp.float32, -bound2, bound2)
    b2 = jax.random.uniform(k_b2, (OUT,), jnp.float32, -bound2, bound2)

    # Pure-JAX reference.
    ref = jax.nn.sigmoid(jnp.maximum(x @ w1 + b1, 0.0) @ w2 + b2)

    # 1) Default config (single large block, one grid step at this tiny B).
    out = neural_net_forward(x, w1, b1, w2, b2)
    jax.block_until_ready(out)
    assert out.shape == (B, 1)
    err = jnp.max(jnp.abs(out - ref))
    assert jnp.allclose(out, ref, atol=1e-4, rtol=0.0), f"max abs err {err}"

    # 2) Small blocks -> multi-step "parallel" grid (exercises the pipelined path).
    out2 = neural_net_forward(x, w1, b1, w2, b2, block_batch=1024)
    jax.block_until_ready(out2)
    err2 = jnp.max(jnp.abs(out2 - ref))
    assert jnp.allclose(out2, ref, atol=1e-4, rtol=0.0), f"max abs err {err2}"

    # 3) Feature-major fast path (no wrapper transpose HBM pass).
    out3 = neural_net_forward(jnp.asarray(x.T), w1, b1, w2, b2, feature_major=True)
    jax.block_until_ready(out3)
    err3 = jnp.max(jnp.abs(out3 - ref))
    assert jnp.allclose(out3, ref, atol=1e-4, rtol=0.0), f"max abs err {err3}"

    print("KERNEL_OK")
</pallas_src>

<mosaic_0001>
module attributes {stable_mosaic.version = 11 : i64} {
  func.func @mlp_kernel(%arg0: i32, %arg1: memref<4x16x128xf32, #tpu.memory_space<vmem>>, %arg2: memref<32xf32, #tpu.memory_space<smem>>, %arg3: memref<8xf32, #tpu.memory_space<smem>>, %arg4: memref<8xf32, #tpu.memory_space<smem>>, %arg5: memref<1xf32, #tpu.memory_space<smem>>, %arg6: memref<16x128xf32, #tpu.memory_space<vmem>>) attributes {dimension_semantics = [#tpu.dimension_semantics<parallel>], iteration_bounds = array<i64: 1>, scalar_prefetch = 0 : i64, scratch_operands = 0 : i64, tpu.core_type = #tpu.core_type<tc>, window_params = [{transform_indices = @transform_0, window_bounds = array<i64: 4, 16, 128>}, {transform_indices = @transform_1, window_bounds = array<i64: 32>}, {transform_indices = @transform_2, window_bounds = array<i64: 8>}, {transform_indices = @transform_3, window_bounds = array<i64: 8>}, {transform_indices = @transform_4, window_bounds = array<i64: 1>}, {transform_indices = @transform_5, window_bounds = array<i64: 16, 128>}]} {
    %c0 = arith.constant 0 : index
    %0 = memref.load %arg2[%c0] : memref<32xf32, #tpu.memory_space<smem>>
    %c8 = arith.constant 8 : index
    %1 = memref.load %arg2[%c8] : memref<32xf32, #tpu.memory_space<smem>>
    %c16 = arith.constant 16 : index
    %2 = memref.load %arg2[%c16] : memref<32xf32, #tpu.memory_space<smem>>
    %c24 = arith.constant 24 : index
    %3 = memref.load %arg2[%c24] : memref<32xf32, #tpu.memory_space<smem>>
    %c1 = arith.constant 1 : index
    %4 = memref.load %arg2[%c1] : memref<32xf32, #tpu.memory_space<smem>>
    %c9 = arith.constant 9 : index
    %5 = memref.load %arg2[%c9] : memref<32xf32, #tpu.memory_space<smem>>
    %c17 = arith.constant 17 : index
    %6 = memref.load %arg2[%c17] : memref<32xf32, #tpu.memory_space<smem>>
    %c25 = arith.constant 25 : index
    %7 = memref.load %arg2[%c25] : memref<32xf32, #tpu.memory_space<smem>>
    %c2 = arith.constant 2 : index
    %8 = memref.load %arg2[%c2] : memref<32xf32, #tpu.memory_space<smem>>
    %c10 = arith.constant 10 : index
    %9 = memref.load %arg2[%c10] : memref<32xf32, #tpu.memory_space<smem>>
    %c18 = arith.constant 18 : index
    %10 = memref.load %arg2[%c18] : memref<32xf32, #tpu.memory_space<smem>>
    %c26 = arith.constant 26 : index
    %11 = memref.load %arg2[%c26] : memref<32xf32, #tpu.memory_space<smem>>
    %c3 = arith.constant 3 : index
    %12 = memref.load %arg2[%c3] : memref<32xf32, #tpu.memory_space<smem>>
    %c11 = arith.constant 11 : index
    %13 = memref.load %arg2[%c11] : memref<32xf32, #tpu.memory_space<smem>>
    %c19 = arith.constant 19 : index
    %14 = memref.load %arg2[%c19] : memref<32xf32, #tpu.memory_space<smem>>
    %c27 = arith.constant 27 : index
    %15 = memref.load %arg2[%c27] : memref<32xf32, #tpu.memory_space<smem>>
    %c4 = arith.constant 4 : index
    %16 = memref.load %arg2[%c4] : memref<32xf32, #tpu.memory_space<smem>>
    %c12 = arith.constant 12 : index
    %17 = memref.load %arg2[%c12] : memref<32xf32, #tpu.memory_space<smem>>
    %c20 = arith.constant 20 : index
    %18 = memref.load %arg2[%c20] : memref<32xf32, #tpu.memory_space<smem>>
    %c28 = arith.constant 28 : index
    %19 = memref.load %arg2[%c28] : memref<32xf32, #tpu.memory_space<smem>>
    %c5 = arith.constant 5 : index
    %20 = memref.load %arg2[%c5] : memref<32xf32, #tpu.memory_space<smem>>
    %c13 = arith.constant 13 : index
    %21 = memref.load %arg2[%c13] : memref<32xf32, #tpu.memory_space<smem>>
    %c21 = arith.constant 21 : index
    %22 = memref.load %arg2[%c21] : memref<32xf32, #tpu.memory_space<smem>>
    %c29 = arith.constant 29 : index
    %23 = memref.load %arg2[%c29] : memref<32xf32, #tpu.memory_space<smem>>
    %c6 = arith.constant 6 : index
    %24 = memref.load %arg2[%c6] : memref<32xf32, #tpu.memory_space<smem>>
    %c14 = arith.constant 14 : index
    %25 = memref.load %arg2[%c14] : memref<32xf32, #tpu.memory_space<smem>>
    %c22 = arith.constant 22 : index
    %26 = memref.load %arg2[%c22] : memref<32xf32, #tpu.memory_space<smem>>
    %c30 = arith.constant 30 : index
    %27 = memref.load %arg2[%c30] : memref<32xf32, #tpu.memory_space<smem>>
    %c7 = arith.constant 7 : index
    %28 = memref.load %arg2[%c7] : memref<32xf32, #tpu.memory_space<smem>>
    %c15 = arith.constant 15 : index
    %29 = memref.load %arg2[%c15] : memref<32xf32, #tpu.memory_space<smem>>
    %c23 = arith.constant 23 : index
    %30 = memref.load %arg2[%c23] : memref<32xf32, #tpu.memory_space<smem>>
    %c31 = arith.constant 31 : index
    %31 = memref.load %arg2[%c31] : memref<32xf32, #tpu.memory_space<smem>>
    %c0_0 = arith.constant 0 : index
    %32 = memref.load %arg3[%c0_0] : memref<8xf32, #tpu.memory_space<smem>>
    %c1_1 = arith.constant 1 : index
    %33 = memref.load %arg3[%c1_1] : memref<8xf32, #tpu.memory_space<smem>>
    %c2_2 = arith.constant 2 : index
    %34 = memref.load %arg3[%c2_2] : memref<8xf32, #tpu.memory_space<smem>>
    %c3_3 = arith.constant 3 : index
    %35 = memref.load %arg3[%c3_3] : memref<8xf32, #tpu.memory_space<smem>>
    %c4_4 = arith.constant 4 : index
    %36 = memref.load %arg3[%c4_4] : memref<8xf32, #tpu.memory_space<smem>>
    %c5_5 = arith.constant 5 : index
    %37 = memref.load %arg3[%c5_5] : memref<8xf32, #tpu.memory_space<smem>>
    %c6_6 = arith.constant 6 : index
    %38 = memref.load %arg3[%c6_6] : memref<8xf32, #tpu.memory_space<smem>>
    %c7_7 = arith.constant 7 : index
    %39 = memref.load %arg3[%c7_7] : memref<8xf32, #tpu.memory_space<smem>>
    %c0_8 = arith.constant 0 : index
    %40 = memref.load %arg4[%c0_8] : memref<8xf32, #tpu.memory_space<smem>>
    %c1_9 = arith.constant 1 : index
    %41 = memref.load %arg4[%c1_9] : memref<8xf32, #tpu.memory_space<smem>>
    %c2_10 = arith.constant 2 : index
    %42 = memref.load %arg4[%c2_10] : memref<8xf32, #tpu.memory_space<smem>>
    %c3_11 = arith.constant 3 : index
    %43 = memref.load %arg4[%c3_11] : memref<8xf32, #tpu.memory_space<smem>>
    %c4_12 = arith.constant 4 : index
    %44 = memref.load %arg4[%c4_12] : memref<8xf32, #tpu.memory_space<smem>>
    %c5_13 = arith.constant 5 : index
    %45 = memref.load %arg4[%c5_13] : memref<8xf32, #tpu.memory_space<smem>>
    %c6_14 = arith.constant 6 : index
    %46 = memref.load %arg4[%c6_14] : memref<8xf32, #tpu.memory_space<smem>>
    %c7_15 = arith.constant 7 : index
    %47 = memref.load %arg4[%c7_15] : memref<8xf32, #tpu.memory_space<smem>>
    %c0_16 = arith.constant 0 : index
    %48 = memref.load %arg5[%c0_16] : memref<1xf32, #tpu.memory_space<smem>>
    %c0_i32 = arith.constant 0 : i32
    %c1_i32 = arith.constant 1 : i32
    %49 = arith.muli %c0_i32, %c1_i32 : i32
    %c0_i32_17 = arith.constant 0 : i32
    %50 = arith.addi %c0_i32_17, %49 : i32
    %c16_i32 = arith.constant 16 : i32
    %51 = arith.muli %50, %c16_i32 : i32
    %52 = tpu.assume_multiple %51, 16 : i32
    %c0_18 = arith.constant 0 : index
    %53 = arith.index_cast %52 : i32 to index
    %c0_19 = arith.constant 0 : index
    %54 = vector.load %arg1[%c0_18, %53, %c0_19] : memref<4x16x128xf32, #tpu.memory_space<vmem>>, vector<1x16x128xf32>
    %55 = vector.shape_cast %54 : vector<1x16x128xf32> to vector<16x128xf32>
    %56 = vector.broadcast %0 : f32 to vector<16x128xf32>
    %57 = arith.mulf %55, %56 : vector<16x128xf32>
    %c1_20 = arith.constant 1 : index
    %58 = arith.index_cast %52 : i32 to index
    %c0_21 = arith.constant 0 : index
    %59 = vector.load %arg1[%c1_20, %58, %c0_21] : memref<4x16x128xf32, #tpu.memory_space<vmem>>, vector<1x16x128xf32>
    %60 = vector.shape_cast %59 : vector<1x16x128xf32> to vector<16x128xf32>
    %61 = vector.broadcast %1 : f32 to vector<16x128xf32>
    %62 = arith.mulf %60, %61 : vector<16x128xf32>
    %63 = arith.addf %57, %62 : vector<16x128xf32>
    %c2_22 = arith.constant 2 : index
    %64 = arith.index_cast %52 : i32 to index
    %c0_23 = arith.constant 0 : index
    %65 = vector.load %arg1[%c2_22, %64, %c0_23] : memref<4x16x128xf32, #tpu.memory_space<vmem>>, vector<1x16x128xf32>
    %66 = vector.shape_cast %65 : vector<1x16x128xf32> to vector<16x128xf32>
    %67 = vector.broadcast %2 : f32 to vector<16x128xf32>
    %68 = arith.mulf %66, %67 : vector<16x128xf32>
    %69 = arith.addf %63, %68 : vector<16x128xf32>
    %c3_24 = arith.constant 3 : index
    %70 = arith.index_cast %52 : i32 to index
    %c0_25 = arith.constant 0 : index
    %71 = vector.load %arg1[%c3_24, %70, %c0_25] : memref<4x16x128xf32, #tpu.memory_space<vmem>>, vector<1x16x128xf32>
    %72 = vector.shape_cast %71 : vector<1x16x128xf32> to vector<16x128xf32>
    %73 = vector.broadcast %3 : f32 to vector<16x128xf32>
    %74 = arith.mulf %72, %73 : vector<16x128xf32>
    %75 = arith.addf %69, %74 : vector<16x128xf32>
    %76 = vector.broadcast %32 : f32 to vector<16x128xf32>
    %77 = arith.addf %75, %76 : vector<16x128xf32>
    %cst = arith.constant 0.000000e+00 : f32
    %78 = vector.broadcast %cst : f32 to vector<16x128xf32>
    %79 = arith.maximumf %77, %78 : vector<16x128xf32>
    %80 = vector.broadcast %40 : f32 to vector<16x128xf32>
    %81 = arith.mulf %79, %80 : vector<16x128xf32>
    %c0_26 = arith.constant 0 : index
    %82 = arith.index_cast %52 : i32 to index
    %c0_27 = arith.constant 0 : index
    %83 = vector.load %arg1[%c0_26, %82, %c0_27] : memref<4x16x128xf32, #tpu.memory_space<vmem>>, vector<1x16x128xf32>
    %84 = vector.shape_cast %83 : vector<1x16x128xf32> to vector<16x128xf32>
    %85 = vector.broadcast %4 : f32 to vector<16x128xf32>
    %86 = arith.mulf %84, %85 : vector<16x128xf32>
    %c1_28 = arith.constant 1 : index
    %87 = arith.index_cast %52 : i32 to index
    %c0_29 = arith.constant 0 : index
    %88 = vector.load %arg1[%c1_28, %87, %c0_29] : memref<4x16x128xf32, #tpu.memory_space<vmem>>, vector<1x16x128xf32>
    %89 = vector.shape_cast %88 : vector<1x16x128xf32> to vector<16x128xf32>
    %90 = vector.broadcast %5 : f32 to vector<16x128xf32>
    %91 = arith.mulf %89, %90 : vector<16x128xf32>
    %92 = arith.addf %86, %91 : vector<16x128xf32>
    %c2_30 = arith.constant 2 : index
    %93 = arith.index_cast %52 : i32 to index
    %c0_31 = arith.constant 0 : index
    %94 = vector.load %arg1[%c2_30, %93, %c0_31] : memref<4x16x128xf32, #tpu.memory_space<vmem>>, vector<1x16x128xf32>
    %95 = vector.shape_cast %94 : vector<1x16x128xf32> to vector<16x128xf32>
    %96 = vector.broadcast %6 : f32 to vector<16x128xf32>
    %97 = arith.mulf %95, %96 : vector<16x128xf32>
    %98 = arith.addf %92, %97 : vector<16x128xf32>
    %c3_32 = arith.constant 3 : index
    %99 = arith.index_cast %52 : i32 to index
    %c0_33 = arith.constant 0 : index
    %100 = vector.load %arg1[%c3_32, %99, %c0_33] : memref<4x16x128xf32, #tpu.memory_space<vmem>>, vector<1x16x128xf32>
    %101 = vector.shape_cast %100 : vector<1x16x128xf32> to vector<16x128xf32>
    %102 = vector.broadcast %7 : f32 to vector<16x128xf32>
    %103 = arith.mulf %101, %102 : vector<16x128xf32>
    %104 = arith.addf %98, %103 : vector<16x128xf32>
    %105 = vector.broadcast %33 : f32 to vector<16x128xf32>
    %106 = arith.addf %104, %105 : vector<16x128xf32>
    %cst_34 = arith.constant 0.000000e+00 : f32
    %107 = vector.broadcast %cst_34 : f32 to vector<16x128xf32>
    %108 = arith.maximumf %106, %107 : vector<16x128xf32>
    %109 = vector.broadcast %41 : f32 to vector<16x128xf32>
    %110 = arith.mulf %108, %109 : vector<16x128xf32>
    %111 = arith.addf %81, %110 : vector<16x128xf32>
    %c0_35 = arith.constant 0 : index
    %112 = arith.index_cast %52 : i32 to index
    %c0_36 = arith.constant 0 : index
    %113 = vector.load %arg1[%c0_35, %112, %c0_36] : memref<4x16x128xf32, #tpu.memory_space<vmem>>, vector<1x16x128xf32>
    %114 = vector.shape_cast %113 : vector<1x16x128xf32> to vector<16x128xf32>
    %115 = vector.broadcast %8 : f32 to vector<16x128xf32>
    %116 = arith.mulf %114, %115 : vector<16x128xf32>
    %c1_37 = arith.constant 1 : index
    %117 = arith.index_cast %52 : i32 to index
    %c0_38 = arith.constant 0 : index
    %118 = vector.load %arg1[%c1_37, %117, %c0_38] : memref<4x16x128xf32, #tpu.memory_space<vmem>>, vector<1x16x128xf32>
    %119 = vector.shape_cast %118 : vector<1x16x128xf32> to vector<16x128xf32>
    %120 = vector.broadcast %9 : f32 to vector<16x128xf32>
    %121 = arith.mulf %119, %120 : vector<16x128xf32>
    %122 = arith.addf %116, %121 : vector<16x128xf32>
    %c2_39 = arith.constant 2 : index
    %123 = arith.index_cast %52 : i32 to index
    %c0_40 = arith.constant 0 : index
    %124 = vector.load %arg1[%c2_39, %123, %c0_40] : memref<4x16x128xf32, #tpu.memory_space<vmem>>, vector<1x16x128xf32>
    %125 = vector.shape_cast %124 : vector<1x16x128xf32> to vector<16x128xf32>
    %126 = vector.broadcast %10 : f32 to vector<16x128xf32>
    %127 = arith.mulf %125, %126 : vector<16x128xf32>
    %128 = arith.addf %122, %127 : vector<16x128xf32>
    %c3_41 = arith.constant 3 : index
    %129 = arith.index_cast %52 : i32 to index
    %c0_42 = arith.constant 0 : index
    %130 = vector.load %arg1[%c3_41, %129, %c0_42] : memref<4x16x128xf32, #tpu.memory_space<vmem>>, vector<1x16x128xf32>
    %131 = vector.shape_cast %130 : vector<1x16x128xf32> to vector<16x128xf32>
    %132 = vector.broadcast %11 : f32 to vector<16x128xf32>
    %133 = arith.mulf %131, %132 : vector<16x128xf32>
    %134 = arith.addf %128, %133 : vector<16x128xf32>
    %135 = vector.broadcast %34 : f32 to vector<16x128xf32>
    %136 = arith.addf %134, %135 : vector<16x128xf32>
    %cst_43 = arith.constant 0.000000e+00 : f32
    %137 = vector.broadcast %cst_43 : f32 to vector<16x128xf32>
    %138 = arith.maximumf %136, %137 : vector<16x128xf32>
    %139 = vector.broadcast %42 : f32 to vector<16x128xf32>
    %140 = arith.mulf %138, %139 : vector<16x128xf32>
    %141 = arith.addf %111, %140 : vector<16x128xf32>
    %c0_44 = arith.constant 0 : index
    %142 = arith.index_cast %52 : i32 to index
    %c0_45 = arith.constant 0 : index
    %143 = vector.load %arg1[%c0_44, %142, %c0_45] : memref<4x16x128xf32, #tpu.memory_space<vmem>>, vector<1x16x128xf32>
    %144 = vector.shape_cast %143 : vector<1x16x128xf32> to vector<16x128xf32>
    %145 = vector.broadcast %12 : f32 to vector<16x128xf32>
    %146 = arith.mulf %144, %145 : vector<16x128xf32>
    %c1_46 = arith.constant 1 : index
    %147 = arith.index_cast %52 : i32 to index
    %c0_47 = arith.constant 0 : index
    %148 = vector.load %arg1[%c1_46, %147, %c0_47] : memref<4x16x128xf32, #tpu.memory_space<vmem>>, vector<1x16x128xf32>
    %149 = vector.shape_cast %148 : vector<1x16x128xf32> to vector<16x128xf32>
    %150 = vector.broadcast %13 : f32 to vector<16x128xf32>
    %151 = arith.mulf %149, %150 : vector<16x128xf32>
    %152 = arith.addf %146, %151 : vector<16x128xf32>
    %c2_48 = arith.constant 2 : index
    %153 = arith.index_cast %52 : i32 to index
    %c0_49 = arith.constant 0 : index
    %154 = vector.load %arg1[%c2_48, %153, %c0_49] : memref<4x16x128xf32, #tpu.memory_space<vmem>>, vector<1x16x128xf32>
    %155 = vector.shape_cast %154 : vector<1x16x128xf32> to vector<16x128xf32>
    %156 = vector.broadcast %14 : f32 to vector<16x128xf32>
    %157 = arith.mulf %155, %156 : vector<16x128xf32>
    %158 = arith.addf %152, %157 : vector<16x128xf32>
    %c3_50 = arith.constant 3 : index
    %159 = arith.index_cast %52 : i32 to index
    %c0_51 = arith.constant 0 : index
    %160 = vector.load %arg1[%c3_50, %159, %c0_51] : memref<4x16x128xf32, #tpu.memory_space<vmem>>, vector<1x16x128xf32>
    %161 = vector.shape_cast %160 : vector<1x16x128xf32> to vector<16x128xf32>
    %162 = vector.broadcast %15 : f32 to vector<16x128xf32>
    %163 = arith.mulf %161, %162 : vector<16x128xf32>
    %164 = arith.addf %158, %163 : vector<16x128xf32>
    %165 = vector.broadcast %35 : f32 to vector<16x128xf32>
    %166 = arith.addf %164, %165 : vector<16x128xf32>
    %cst_52 = arith.constant 0.000000e+00 : f32
    %167 = vector.broadcast %cst_52 : f32 to vector<16x128xf32>
    %168 = arith.maximumf %166, %167 : vector<16x128xf32>
    %169 = vector.broadcast %43 : f32 to vector<16x128xf32>
    %170 = arith.mulf %168, %169 : vector<16x128xf32>
    %171 = arith.addf %141, %170 : vector<16x128xf32>
    %c0_53 = arith.constant 0 : index
    %172 = arith.index_cast %52 : i32 to index
    %c0_54 = arith.constant 0 : index
    %173 = vector.load %arg1[%c0_53, %172, %c0_54] : memref<4x16x128xf32, #tpu.memory_space<vmem>>, vector<1x16x128xf32>
    %174 = vector.shape_cast %173 : vector<1x16x128xf32> to vector<16x128xf32>
    %175 = vector.broadcast %16 : f32 to vector<16x128xf32>
    %176 = arith.mulf %174, %175 : vector<16x128xf32>
    %c1_55 = arith.constant 1 : index
    %177 = arith.index_cast %52 : i32 to index
    %c0_56 = arith.constant 0 : index
    %178 = vector.load %arg1[%c1_55, %177, %c0_56] : memref<4x16x128xf32, #tpu.memory_space<vmem>>, vector<1x16x128xf32>
    %179 = vector.shape_cast %178 : vector<1x16x128xf32> to vector<16x128xf32>
    %180 = vector.broadcast %17 : f32 to vector<16x128xf32>
    %181 = arith.mulf %179, %180 : vector<16x128xf32>
    %182 = arith.addf %176, %181 : vector<16x128xf32>
    %c2_57 = arith.constant 2 : index
    %183 = arith.index_cast %52 : i32 to index
    %c0_58 = arith.constant 0 : index
    %184 = vector.load %arg1[%c2_57, %183, %c0_58] : memref<4x16x128xf32, #tpu.memory_space<vmem>>, vector<1x16x128xf32>
    %185 = vector.shape_cast %184 : vector<1x16x128xf32> to vector<16x128xf32>
    %186 = vector.broadcast %18 : f32 to vector<16x128xf32>
    %187 = arith.mulf %185, %186 : vector<16x128xf32>
    %188 = arith.addf %182, %187 : vector<16x128xf32>
    %c3_59 = arith.constant 3 : index
    %189 = arith.index_cast %52 : i32 to index
    %c0_60 = arith.constant 0 : index
    %190 = vector.load %arg1[%c3_59, %189, %c0_60] : memref<4x16x128xf32, #tpu.memory_space<vmem>>, vector<1x16x128xf32>
    %191 = vector.shape_cast %190 : vector<1x16x128xf32> to vector<16x128xf32>
    %192 = vector.broadcast %19 : f32 to vector<16x128xf32>
    %193 = arith.mulf %191, %192 : vector<16x128xf32>
    %194 = arith.addf %188, %193 : vector<16x128xf32>
    %195 = vector.broadcast %36 : f32 to vector<16x128xf32>
    %196 = arith.addf %194, %195 : vector<16x128xf32>
    %cst_61 = arith.constant 0.000000e+00 : f32
    %197 = vector.broadcast %cst_61 : f32 to vector<16x128xf32>
    %198 = arith.maximumf %196, %197 : vector<16x128xf32>
    %199 = vector.broadcast %44 : f32 to vector<16x128xf32>
    %200 = arith.mulf %198, %199 : vector<16x128xf32>
    %201 = arith.addf %171, %200 : vector<16x128xf32>
    %c0_62 = arith.constant 0 : index
    %202 = arith.index_cast %52 : i32 to index
    %c0_63 = arith.constant 0 : index
    %203 = vector.load %arg1[%c0_62, %202, %c0_63] : memref<4x16x128xf32, #tpu.memory_space<vmem>>, vector<1x16x128xf32>
    %204 = vector.shape_cast %203 : vector<1x16x128xf32> to vector<16x128xf32>
    %205 = vector.broadcast %20 : f32 to vector<16x128xf32>
    %206 = arith.mulf %204, %205 : vector<16x128xf32>
    %c1_64 = arith.constant 1 : index
    %207 = arith.index_cast %52 : i32 to index
    %c0_65 = arith.constant 0 : index
    %208 = vector.load %arg1[%c1_64, %207, %c0_65] : memref<4x16x128xf32, #tpu.memory_space<vmem>>, vector<1x16x128xf32>
    %209 = vector.shape_cast %208 : vector<1x16x128xf32> to vector<16x128xf32>
    %210 = vector.broadcast %21 : f32 to vector<16x128xf32>
    %211 = arith.mulf %209, %210 : vector<16x128xf32>
    %212 = arith.addf %206, %211 : vector<16x128xf32>
    %c2_66 = arith.constant 2 : index
    %213 = arith.index_cast %52 : i32 to index
    %c0_67 = arith.constant 0 : index
    %214 = vector.load %arg1[%c2_66, %213, %c0_67] : memref<4x16x128xf32, #tpu.memory_space<vmem>>, vector<1x16x128xf32>
    %215 = vector.shape_cast %214 : vector<1x16x128xf32> to vector<16x128xf32>
    %216 = vector.broadcast %22 : f32 to vector<16x128xf32>
    %217 = arith.mulf %215, %216 : vector<16x128xf32>
    %218 = arith.addf %212, %217 : vector<16x128xf32>
    %c3_68 = arith.constant 3 : index
    %219 = arith.index_cast %52 : i32 to index
    %c0_69 = arith.constant 0 : index
    %220 = vector.load %arg1[%c3_68, %219, %c0_69] : memref<4x16x128xf32, #tpu.memory_space<vmem>>, vector<1x16x128xf32>
    %221 = vector.shape_cast %220 : vector<1x16x128xf32> to vector<16x128xf32>
    %222 = vector.broadcast %23 : f32 to vector<16x128xf32>
    %223 = arith.mulf %221, %222 : vector<16x128xf32>
    %224 = arith.addf %218, %223 : vector<16x128xf32>
    %225 = vector.broadcast %37 : f32 to vector<16x128xf32>
    %226 = arith.addf %224, %225 : vector<16x128xf32>
    %cst_70 = arith.constant 0.000000e+00 : f32
    %227 = vector.broadcast %cst_70 : f32 to vector<16x128xf32>
    %228 = arith.maximumf %226, %227 : vector<16x128xf32>
    %229 = vector.broadcast %45 : f32 to vector<16x128xf32>
    %230 = arith.mulf %228, %229 : vector<16x128xf32>
    %231 = arith.addf %201, %230 : vector<16x128xf32>
    %c0_71 = arith.constant 0 : index
    %232 = arith.index_cast %52 : i32 to index
    %c0_72 = arith.constant 0 : index
    %233 = vector.load %arg1[%c0_71, %232, %c0_72] : memref<4x16x128xf32, #tpu.memory_space<vmem>>, vector<1x16x128xf32>
    %234 = vector.shape_cast %233 : vector<1x16x128xf32> to vector<16x128xf32>
    %235 = vector.broadcast %24 : f32 to vector<16x128xf32>
    %236 = arith.mulf %234, %235 : vector<16x128xf32>
    %c1_73 = arith.constant 1 : index
    %237 = arith.index_cast %52 : i32 to index
    %c0_74 = arith.constant 0 : index
    %238 = vector.load %arg1[%c1_73, %237, %c0_74] : memref<4x16x128xf32, #tpu.memory_space<vmem>>, vector<1x16x128xf32>
    %239 = vector.shape_cast %238 : vector<1x16x128xf32> to vector<16x128xf32>
    %240 = vector.broadcast %25 : f32 to vector<16x128xf32>
    %241 = arith.mulf %239, %240 : vector<16x128xf32>
    %242 = arith.addf %236, %241 : vector<16x128xf32>
    %c2_75 = arith.constant 2 : index
    %243 = arith.index_cast %52 : i32 to index
    %c0_76 = arith.constant 0 : index
    %244 = vector.load %arg1[%c2_75, %243, %c0_76] : memref<4x16x128xf32, #tpu.memory_space<vmem>>, vector<1x16x128xf32>
    %245 = vector.shape_cast %244 : vector<1x16x128xf32> to vector<16x128xf32>
    %246 = vector.broadcast %26 : f32 to vector<16x128xf32>
    %247 = arith.mulf %245, %246 : vector<16x128xf32>
    %248 = arith.addf %242, %247 : vector<16x128xf32>
    %c3_77 = arith.constant 3 : index
    %249 = arith.index_cast %52 : i32 to index
    %c0_78 = arith.constant 0 : index
    %250 = vector.load %arg1[%c3_77, %249, %c0_78] : memref<4x16x128xf32, #tpu.memory_space<vmem>>, vector<1x16x128xf32>
    %251 = vector.shape_cast %250 : vector<1x16x128xf32> to vector<16x128xf32>
    %252 = vector.broadcast %27 : f32 to vector<16x128xf32>
    %253 = arith.mulf %251, %252 : vector<16x128xf32>
    %254 = arith.addf %248, %253 : vector<16x128xf32>
    %255 = vector.broadcast %38 : f32 to vector<16x128xf32>
    %256 = arith.addf %254, %255 : vector<16x128xf32>
    %cst_79 = arith.constant 0.000000e+00 : f32
    %257 = vector.broadcast %cst_79 : f32 to vector<16x128xf32>
    %258 = arith.maximumf %256, %257 : vector<16x128xf32>
    %259 = vector.broadcast %46 : f32 to vector<16x128xf32>
    %260 = arith.mulf %258, %259 : vector<16x128xf32>
    %261 = arith.addf %231, %260 : vector<16x128xf32>
    %c0_80 = arith.constant 0 : index
    %262 = arith.index_cast %52 : i32 to index
    %c0_81 = arith.constant 0 : index
    %263 = vector.load %arg1[%c0_80, %262, %c0_81] : memref<4x16x128xf32, #tpu.memory_space<vmem>>, vector<1x16x128xf32>
    %264 = vector.shape_cast %263 : vector<1x16x128xf32> to vector<16x128xf32>
    %265 = vector.broadcast %28 : f32 to vector<16x128xf32>
    %266 = arith.mulf %264, %265 : vector<16x128xf32>
    %c1_82 = arith.constant 1 : index
    %267 = arith.index_cast %52 : i32 to index
    %c0_83 = arith.constant 0 : index
    %268 = vector.load %arg1[%c1_82, %267, %c0_83] : memref<4x16x128xf32, #tpu.memory_space<vmem>>, vector<1x16x128xf32>
    %269 = vector.shape_cast %268 : vector<1x16x128xf32> to vector<16x128xf32>
    %270 = vector.broadcast %29 : f32 to vector<16x128xf32>
    %271 = arith.mulf %269, %270 : vector<16x128xf32>
    %272 = arith.addf %266, %271 : vector<16x128xf32>
    %c2_84 = arith.constant 2 : index
    %273 = arith.index_cast %52 : i32 to index
    %c0_85 = arith.constant 0 : index
    %274 = vector.load %arg1[%c2_84, %273, %c0_85] : memref<4x16x128xf32, #tpu.memory_space<vmem>>, vector<1x16x128xf32>
    %275 = vector.shape_cast %274 : vector<1x16x128xf32> to vector<16x128xf32>
    %276 = vector.broadcast %30 : f32 to vector<16x128xf32>
    %277 = arith.mulf %275, %276 : vector<16x128xf32>
    %278 = arith.addf %272, %277 : vector<16x128xf32>
    %c3_86 = arith.constant 3 : index
    %279 = arith.index_cast %52 : i32 to index
    %c0_87 = arith.constant 0 : index
    %280 = vector.load %arg1[%c3_86, %279, %c0_87] : memref<4x16x128xf32, #tpu.memory_space<vmem>>, vector<1x16x128xf32>
    %281 = vector.shape_cast %280 : vector<1x16x128xf32> to vector<16x128xf32>
    %282 = vector.broadcast %31 : f32 to vector<16x128xf32>
    %283 = arith.mulf %281, %282 : vector<16x128xf32>
    %284 = arith.addf %278, %283 : vector<16x128xf32>
    %285 = vector.broadcast %39 : f32 to vector<16x128xf32>
    %286 = arith.addf %284, %285 : vector<16x128xf32>
    %cst_88 = arith.constant 0.000000e+00 : f32
    %287 = vector.broadcast %cst_88 : f32 to vector<16x128xf32>
    %288 = arith.maximumf %286, %287 : vector<16x128xf32>
    %289 = vector.broadcast %47 : f32 to vector<16x128xf32>
    %290 = arith.mulf %288, %289 : vector<16x128xf32>
    %291 = arith.addf %261, %290 : vector<16x128xf32>
    %292 = vector.broadcast %48 : f32 to vector<16x128xf32>
    %293 = arith.addf %291, %292 : vector<16x128xf32>
    %294 = math.tanh %293 : vector<16x128xf32>
    %cst_89 = arith.constant 5.000000e-01 : f32
    %295 = vector.broadcast %cst_89 : f32 to vector<16x128xf32>
    %296 = arith.mulf %295, %294 : vector<16x128xf32>
    %cst_90 = arith.constant 5.000000e-01 : f32
    %297 = vector.broadcast %cst_90 : f32 to vector<16x128xf32>
    %298 = arith.addf %296, %297 : vector<16x128xf32>
    %299 = arith.index_cast %52 : i32 to index
    %c0_91 = arith.constant 0 : index
    %300 = vector.load %arg6[%299, %c0_91] : memref<16x128xf32, #tpu.memory_space<vmem>>, vector<16x128xf32>
    tpu.vector_store %arg6[%299, %c0_91], %298 {strides = array<i32>} : memref<16x128xf32, #tpu.memory_space<vmem>>, vector<16x128xf32>,
    %c1_i32_92 = arith.constant 1 : i32
    return
  }
  func.func @transform_0(%arg0: i32) -> (i32, i32, i32) {
    %c0_i32 = arith.constant 0 : i32
    %c0_i32_0 = arith.constant 0 : i32
    %c0_i32_1 = arith.constant 0 : i32
    return %c0_i32, %arg0, %c0_i32_0 : i32, i32, i32
  }
  func.func @transform_1(%arg0: i32) -> i32 {
    %c0_i32 = arith.constant 0 : i32
    %c0_i32_0 = arith.constant 0 : i32
    return %c0_i32 : i32
  }
  func.func @transform_2(%arg0: i32) -> i32 {
    %c0_i32 = arith.constant 0 : i32
    %c0_i32_0 = arith.constant 0 : i32
    return %c0_i32 : i32
  }
  func.func @transform_3(%arg0: i32) -> i32 {
    %c0_i32 = arith.constant 0 : i32
    %c0_i32_0 = arith.constant 0 : i32
    return %c0_i32 : i32
  }
  func.func @transform_4(%arg0: i32) -> i32 {
    %c0_i32 = arith.constant 0 : i32
    %c0_i32_0 = arith.constant 0 : i32
    return %c0_i32 : i32
  }
  func.func @transform_5(%arg0: i32) -> (i32, i32) {
    %c0_i32 = arith.constant 0 : i32
    %c0_i32_0 = arith.constant 0 : i32
    return %arg0, %c0_i32 : i32, i32
  }
}

</mosaic_0001>

<bundles_post_ra>
// kernel: tpu_custom_call.1
= control target key start
LH: loop header
LB: loop body
LE: loop exit
PB: predicated region body
PF: predicated region fallthrough
CT: control target
= control target key end

     0   :  { %11 = vsyncpa [#allocation4], 0  ;;  %s831_s0 = inlined_call_operand.hbm [shape: f32[4,16,128], index: 0, kind: input, shape index: {}]   ;;  %s832_s1 = inlined_call_operand.vmem [shape: f32[32], index: 1, kind: input, shape index: {}]   ;;  %s833_s2 = inlined_call_operand.vmem [shape: f32[8], index: 2, kind: input, shape index: {}]   ;;  %s834_s3 = inlined_call_operand.vmem [shape: f32[8], index: 3, kind: input, shape index: {}]   ;;  %s835_s4 = inlined_call_operand.<no memory space> [shape: f32[1], index: 4, kind: input, shape index: {}]   ;;  %s836_s5 = inlined_call_operand.hbm [shape: f32[16,128], index: 5, kind: output, shape index: {}]  }
   0x1   :  { %12 = vsyncpa [#allocation6], 0 }
   0x2   :  { %13 = vsyncpa [#allocation9], 0  ;;  %s42_s20 = sshll.u32 %s833_s2, 4  ;;  %s43_s20 = int_to_ptr.vmem [resolvable:$true] %s42_s20 }
   0x3   :  { %14 = vsyncpa [#allocation5], 0  ;;  %s19_s23 = sshll.u32 %s831_s0, 4  ;;  %s542_s24 = smov [#allocation8]   ;;  %s20_s23 = int_to_ptr.hbm [resolvable:$true] %s19_s23 }
   0x4   :  { %45 = dma.vmem_to_smem %s43_s20, 16, %s542_s24, [#allocation9]  }
   0x5   :  { %s543_s25 = smov [#allocation3]   ;;  %s544_s27 = smov 128  }
   0x6   :  { %s21_s26 = sshll.u32 %s543_s25, 4  ;;  %s545_s28 = smov 8   ;;  %s22_s26 = int_to_ptr.vmem [resolvable:$true] %s21_s26 }
   0x7   :  { %27 = dma.hbm_to_vmem [thread:$0]  %s20_s23, 1024, %s22_s26, [#allocation4], %s544_s27, %s544_s27, %s545_s28  }
   0x8   :  { %s33_s30 = sshll.u32 %s832_s1, 4  ;;  %s51_s0 = sshll.u32 %s834_s3, 4  ;;  %s34_s30 = int_to_ptr.vmem [resolvable:$true] %s33_s30  ;;  %s52_s0 = int_to_ptr.vmem [resolvable:$true] %s51_s0 }
   0x9   :  { %s546_s8 = smov [#allocation7]   ;;  %s547_s9 = smov [#allocation10]  }
   0xa   :  { %36 = dma.vmem_to_smem %s34_s30, 16, %s546_s8, [#allocation6]  }
   0xb   :  { %54 = dma.vmem_to_smem %s52_s0, 16, %s547_s9, [#allocation9]  }
   0xc   :  { %534 = dma.done.wait [#allocation4], 1024  }
   0xd   :  { %535 = vsyncadd [#allocation4], 4294966272 }
   0xe   :  { %536 = dma.done.wait [#allocation6], 16  }
   0xf   :  { %537 = vsyncadd [#allocation6], 4294967280 }
  0x10   :  { %538 = dma.done.wait [#allocation9], 32  }
  0x11   :  { %539 = vsyncadd [#allocation9], 4294967264 }
  0x12   :  { %73 = sfence }
  0x13   :  { %s74_s10 = sld [smem:[#allocation7]]  ;;  %v598_v0 = vld [vmem:[#allocation3] sm:$0xff]  ;;  %v600_v1 = vld [vmem:[#allocation3 + $0x8] sm:$0xff]  ;;  %v604_v2 = vld [vmem:[#allocation3 + $0x10] sm:$0xff] }
  0x14   :  { %s394_s11 = sld [smem:[#allocation7 + $0x8]]  ;;  %v606_v3 = vld [vmem:[#allocation3 + $0x18] sm:$0xff]  ;;  %v614_v8 = vld [vmem:[#allocation3 + $0x20] sm:$0xff]  ;;  %v616_v9 = vld [vmem:[#allocation3 + $0x28] sm:$0xff] }
  0x15   :  { %s395_s1 = sld [smem:[#allocation7 + $0x10]]  ;;  %v628_v15 = vld [vmem:[#allocation3 + $0x30] sm:$0xff]  ;;  %v633_v19 = vld [vmem:[#allocation3 + $0x38] sm:$0xff] }
  0x16   :  { %s594_s12 = sld [smem:[#allocation7 + $0x18]] }
  0x17   :  { %s596_s13 = sld [smem:[#allocation7 + $0x1]] }
  0x18   :  { %s602_s3 = sld [smem:[#allocation7 + $0x9]] }
  0x19   :  { %s608_s14 = sld [smem:[#allocation7 + $0x11]]  ;;  %v125_v4 = vstv %s74_s10 }
  0x1a   :  { %s610_s15 = sld [smem:[#allocation7 + $0x19]]  ;;  %v126_v5 = vmul.f32 %v125_v4, %v598_v0  ;;  %v127_v6 = vmul.f32 %v125_v4, %v600_v1  ;;  %v132_v7 = vstv %s394_s11 }
  0x1b   :  { %s618_s16 = sld [smem:[#allocation7 + $0x2]]  ;;  %v133_v10 = vmul.f32 %v132_v7, %v604_v2  ;;  %v134_v11 = vmul.f32 %v132_v7, %v606_v3  ;;  %v141_v12 = vstv %s395_s1 }
  0x1c   :  { %s622_s17 = sld [smem:[#allocation7 + $0xa]]  ;;  %v142_v13 = vmul.f32 %v141_v12, %v614_v8  ;;  %v143_v14 = vmul.f32 %v141_v12, %v616_v9  ;;  %v150_v16 = vstv %s594_s12 }
  0x1d   :  { %s624_s18 = sld [smem:[#allocation7 + $0x12]]  ;;  %v135_v17 = vadd.f32 %v133_v10, %v126_v5  ;;  %v136_v18 = vadd.f32 %v134_v11, %v127_v6  ;;  %v163_v20 = vstv %s596_s13  ;;  %v151_v24 = vmul.f32 %v150_v16, %v628_v15 }
  0x1e   :  { %s631_s19 = sld [smem:[#allocation7 + $0x1a]]  ;;  %v166_v21 = vstv %s602_s3  ;;  %v164_v22 = vmul.f32 %v163_v20, %v598_v0  ;;  %v165_v23 = vmul.f32 %v163_v20, %v600_v1  ;;  %v152_v28 = vmul.f32 %v150_v16, %v633_v19 }
  0x1f   :  { %s637_s20 = sld [smem:[#allocation7 + $0x3]]  ;;  %v167_v25 = vmul.f32 %v166_v21, %v604_v2  ;;  %v168_v26 = vmul.f32 %v166_v21, %v606_v3  ;;  %v171_v27 = vstv %s608_s14  ;;  %v144_v32 = vadd.f32 %v142_v13, %v135_v17 }
  0x20   :  { %s641_s21 = sld [smem:[#allocation7 + $0xb]]  ;;  %v172_v29 = vmul.f32 %v171_v27, %v614_v8  ;;  %v173_v30 = vmul.f32 %v171_v27, %v616_v9  ;;  %v176_v31 = vstv %s610_s15  ;;  %v145_v33 = vadd.f32 %v143_v14, %v136_v18 }
  0x21   :  { %s647_s22 = sld [smem:[#allocation7 + $0x13]]  ;;  %v169_v34 = vadd.f32 %v167_v25, %v164_v22  ;;  %v170_v35 = vadd.f32 %v168_v26, %v165_v23  ;;  %v191_v36 = vstv %s618_s16  ;;  %v177_v39 = vmul.f32 %v176_v31, %v628_v15 }
  0x22   :  { %s653_s23 = sld [smem:[#allocation7 + $0x1b]]  ;;  %v194_v37 = vstv %s622_s17  ;;  %v178_v40 = vmul.f32 %v176_v31, %v633_v19  ;;  %v192_v41 = vmul.f32 %v191_v36, %v598_v0  ;;  %v193_v42 = vmul.f32 %v191_v36, %v600_v1 }
  0x23   :  { %s655_s24 = sld [smem:[#allocation7 + $0x4]]  ;;  %v199_v38 = vstv %s624_s18  ;;  %v174_v43 = vadd.f32 %v172_v29, %v169_v34  ;;  %v175_v44 = vadd.f32 %v173_v30, %v170_v35  ;;  %v195_v45 = vmul.f32 %v194_v37, %v604_v2 }
  0x24   :  { %s660_s25 = sld [smem:[#allocation7 + $0xc]]  ;;  %v196_v46 = vmul.f32 %v194_v37, %v606_v3  ;;  %v672_v47 = vadd.f32 %v151_v24, %v144_v32  ;;  %v674_v48 = vadd.f32 %v152_v28, %v145_v33  ;;  %v200_v49 = vmul.f32 %v199_v38, %v614_v8 }
  0x25   :  { %s666_s26 = sld [smem:[#allocation7 + $0x14]]  ;;  %v219_v50 = vstv %s637_s20  ;;  %v197_v51 = vadd.f32 %v195_v45, %v192_v41  ;;  %v201_v53 = vmul.f32 %v199_v38, %v616_v9  ;;  %v204_v54 = vstv %s631_s19 }
  0x26   :  { %s670_s29 = sld [smem:[#allocation7 + $0x1c]]  ;;  %v198_v52 = vadd.f32 %v196_v46, %v193_v42  ;;  %v220_v55 = vmul.f32 %v219_v50, %v598_v0  ;;  %v221_v56 = vmul.f32 %v219_v50, %v600_v1  ;;  %v222_v57 = vstv %s641_s21 }
  0x27   :  { %s678_s2 = sld [smem:[#allocation7 + $0x5]]  ;;  %v227_v58 = vstv %s647_s22  ;;  %v690_v59 = vadd.f32 %v177_v39, %v174_v43  ;;  %v692_v60 = vadd.f32 %v178_v40, %v175_v44  ;;  %v223_v61 = vmul.f32 %v222_v57, %v604_v2 }
  0x28   :  { %s682_s30 = sld [smem:[#allocation7 + $0xd]]  ;;  %v224_v62 = vmul.f32 %v222_v57, %v606_v3  ;;  %v205_v63 = vmul.f32 %v204_v54, %v628_v15  ;;  %v206_v4 = vmul.f32 %v204_v54, %v633_v19  ;;  %v232_v5 = vstv %s653_s23 }
  0x29   :  { %s688_s6 = sld [smem:[#allocation7 + $0x15]]  ;;  %v247_v6 = vstv %s655_s24  ;;  %v225_v7 = vadd.f32 %v223_v61, %v220_v55  ;;  %v228_v11 = vmul.f32 %v227_v58, %v614_v8  ;;  %v229_v12 = vmul.f32 %v227_v58, %v616_v9 }
  0x2a   :  { %s696_s7 = sld [smem:[#allocation7 + $0x1d]]  ;;  %v226_v10 = vadd.f32 %v224_v62, %v221_v56  ;;  %v202_v13 = vadd.f32 %v200_v49, %v197_v51  ;;  %v203_v14 = vadd.f32 %v201_v53, %v198_v52  ;;  %v248_v16 = vmul.f32 %v247_v6, %v598_v0 }
  0x2b   :  { %s702_s0 = sld [smem:[#allocation7 + $0x6]]  ;;  %v249_v17 = vmul.f32 %v247_v6, %v600_v1  ;;  %v233_v18 = vmul.f32 %v232_v5, %v628_v15  ;;  %v234_v20 = vmul.f32 %v232_v5, %v633_v19  ;;  %v250_v21 = vstv %s660_s25 }
  0x2c   :  { %s708_s8 = sld [smem:[#allocation7 + $0xe]]  ;;  %v255_v22 = vstv %s666_s26  ;;  %v251_v23 = vmul.f32 %v250_v21, %v604_v2  ;;  %v252_v24 = vmul.f32 %v250_v21, %v606_v3  ;;  %v230_v27 = vadd.f32 %v228_v11, %v225_v7 }
  0x2d   :  { %s714_s9 = sld [smem:[#allocation7 + $0x16]]  ;;  %v256_v25 = vmul.f32 %v255_v22, %v614_v8  ;;  %v257_v26 = vmul.f32 %v255_v22, %v616_v9  ;;  %v231_v28 = vadd.f32 %v229_v12, %v226_v10  ;;  %v260_v29 = vstv %s670_s29 }
  0x2e   :  { %v275_v30 = vstv %s678_s2  ;;  %v253_v31 = vadd.f32 %v251_v23, %v248_v16  ;;  %v254_v32 = vadd.f32 %v252_v24, %v249_v17  ;;  %v261_v33 = vmul.f32 %v260_v29, %v628_v15  ;;  %s724_s10 = sld [smem:[#allocation7 + $0x1e]] }
  0x2f   :  { %v262_v34 = vmul.f32 %v260_v29, %v633_v19  ;;  %v276_v35 = vmul.f32 %v275_v30, %v598_v0  ;;  %v277_v36 = vmul.f32 %v275_v30, %v600_v1  ;;  %v278_v37 = vstv %s682_s30  ;;  %s730_s11 = sld [smem:[#allocation7 + $0x7]] }
  0x30   :  { %v283_v38 = vstv %s688_s6  ;;  %v258_v39 = vadd.f32 %v256_v25, %v253_v31  ;;  %v259_v40 = vadd.f32 %v257_v26, %v254_v32  ;;  %v279_v41 = vmul.f32 %v278_v37, %v604_v2  ;;  %s734_s1 = sld [smem:[#allocation8]] }
  0x31   :  { %v280_v42 = vmul.f32 %v278_v37, %v606_v3  ;;  %v284_v43 = vmul.f32 %v283_v38, %v614_v8  ;;  %v285_v44 = vmul.f32 %v283_v38, %v616_v9  ;;  %v288_v45 = vstv %s696_s7  ;;  %s740_s12 = sld [smem:[#allocation8 + $0x1]]  ;;  %s548_s7 = smov [#allocation11]  }
  0x32   :  { %v303_v46 = vstv %s702_s0  ;;  %v207_v49 = vadd.f32 %v205_v63, %v202_v13  ;;  %v208_v50 = vadd.f32 %v206_v4, %v203_v14  ;;  %v281_v51 = vadd.f32 %v279_v41, %v276_v35  ;;  %s742_s13 = sld [smem:[#allocation8 + $0x2]]  ;;  %s374_s0 = sshll.u32 %s548_s7, 4  ;;  %s375_s0 = int_to_ptr.vmem [resolvable:$true] %s374_s0 }
  0x33   :  { %v282_v52 = vadd.f32 %v280_v42, %v277_v36  ;;  %v235_v53 = vadd.f32 %v233_v18, %v230_v27  ;;  %v289_v54 = vmul.f32 %v288_v45, %v628_v15  ;;  %v290_v55 = vmul.f32 %v288_v45, %v633_v19  ;;  %s747_s3 = sld [smem:[#allocation8 + $0x3]] }
  0x34   :  { %v304_v56 = vmul.f32 %v303_v46, %v598_v0  ;;  %v286_v57 = vadd.f32 %v284_v43, %v281_v51  ;;  %v306_v61 = vstv %s708_s8  ;;  %v311_v62 = vstv %s714_s9  ;;  %s751_s14 = sld [smem:[#allocation8 + $0x4]] }
  0x35   :  { %v287_v58 = vadd.f32 %v285_v44, %v282_v52  ;;  %v236_v63 = vadd.f32 %v234_v20, %v231_v28  ;;  %v263_v4 = vadd.f32 %v261_v33, %v258_v39  ;;  %v264_v5 = vadd.f32 %v262_v34, %v259_v40  ;;  %s754_s15 = sld [smem:[#allocation8 + $0x5]] }
  0x36   :  { %v307_v6 = vmul.f32 %v306_v61, %v604_v2  ;;  %v305_v7 = vmul.f32 %v303_v46, %v600_v1  ;;  %v308_v10 = vmul.f32 %v306_v61, %v606_v3  ;;  %v312_v11 = vmul.f32 %v311_v62, %v614_v8  ;;  %s762_s16 = sld [smem:[#allocation8 + $0x6]] }
  0x37   :  { %v313_v12 = vmul.f32 %v311_v62, %v616_v9  ;;  %v155_v13 = vstv %s734_s1  ;;  %v291_v14 = vadd.f32 %v289_v54, %v286_v57  ;;  %v316_v17 = vstv %s724_s10  ;;  %s767_s17 = sld [smem:[#allocation10]]  ;;  %s376_s10 = sshll.u32 %s836_s5, 4  ;;  %s377_s10 = int_to_ptr.hbm [resolvable:$true] %s376_s10 }
  0x38   :  { %v309_v16 = vadd.f32 %v307_v6, %v304_v56  ;;  %v156_v18 = vadd.f32 %v155_v13, %v672_v47  ;;  %v157_v20 = vadd.f32 %v155_v13, %v674_v48  ;;  %v181_v21 = vstv %s740_s12  ;;  %s773_s18 = sld [smem:[#allocation10 + $0x1]] }
  0x39   :  { %v292_v22 = vadd.f32 %v290_v55, %v287_v58  ;;  %v182_v23 = vadd.f32 %v181_v21, %v690_v59  ;;  %v183_v24 = vadd.f32 %v181_v21, %v692_v60  ;;  %v209_v25 = vstv %s742_s13  ;;  %s776_s19 = sld [smem:[#allocation10 + $0x2]] }
  0x3a   :  { %v331_v26 = vstv %s730_s11  ;;  %v210_v27 = vadd.f32 %v209_v25, %v207_v49  ;;  %v211_v28 = vadd.f32 %v209_v25, %v208_v50  ;;  %v310_v29 = vadd.f32 %v308_v10, %v305_v7  ;;  %s781_s20 = sld [smem:[#allocation10 + $0x3]] }
  0x3b   :  { %v317_v47 = vmul.f32 %v316_v17, %v628_v15  ;;  %v237_v48 = vstv %s747_s3  ;;  %v265_v30 = vstv %s751_s14  ;;  %v314_v31 = vadd.f32 %v312_v11, %v309_v16  ;;  %s783_s21 = sld [smem:[#allocation10 + $0x4]] }
  0x3c   :  { %v318_v32 = vmul.f32 %v316_v17, %v633_v19  ;;  %v158_v59 = vmax.f32 %v156_v18, 0.0  ;;  %v159_v60 = vmax.f32 %v157_v20, 0.0  ;;  %v238_v33 = vadd.f32 %v237_v48, %v235_v53  ;;  %s786_s22 = sld [smem:[#allocation10 + $0x5]] }
  0x3d   :  { %v239_v34 = vadd.f32 %v237_v48, %v236_v63  ;;  %v184_v35 = vmax.f32 %v182_v23, 0.0  ;;  %v185_v36 = vmax.f32 %v183_v24, 0.0  ;;  %v266_v37 = vadd.f32 %v265_v30, %v263_v4  ;;  %s788_s23 = sld [smem:[#allocation7 + $0xf]] }
  0x3e   :  { %v293_v38 = vstv %s754_s15  ;;  %v212_v39 = vmax.f32 %v210_v27, 0.0  ;;  %v213_v40 = vmax.f32 %v211_v28, 0.0  ;;  %v267_v41 = vadd.f32 %v265_v30, %v264_v5  ;;  %s791_s24 = sld [smem:[#allocation7 + $0x17]] }
  0x3f   :  { %v315_v42 = vadd.f32 %v313_v12, %v310_v29  ;;  %v160_v43 = vstv %s767_s17  ;;  %v240_v44 = vmax.f32 %v238_v33, 0.0  ;;  %v241_v45 = vmax.f32 %v239_v34, 0.0  ;;  %s796_s25 = sld [smem:[#allocation7 + $0x1f]] }
  0x40   :  { %v294_v46 = vadd.f32 %v293_v38, %v291_v14  ;;  %v161_v49 = vmul.f32 %v160_v43, %v158_v59  ;;  %v162_v50 = vmul.f32 %v160_v43, %v159_v60  ;;  %v186_v51 = vstv %s773_s18  ;;  %s798_s26 = sld [smem:[#allocation10 + $0x6]] }
  0x41   :  { %v295_v52 = vadd.f32 %v293_v38, %v292_v22  ;;  %v187_v53 = vmul.f32 %v186_v51, %v184_v35  ;;  %v188_v54 = vmul.f32 %v186_v51, %v185_v36  ;;  %v214_v55 = vstv %s776_s19  ;;  %s806_s29 = sld [smem:[#allocation8 + $0x7]] }
  0x42   :  { %v268_v56 = vmax.f32 %v266_v37, 0.0  ;;  %v215_v57 = vmul.f32 %v214_v55, %v212_v39  ;;  %v216_v58 = vmul.f32 %v214_v55, %v213_v40  ;;  %v242_v61 = vstv %s781_s20  ;;  %s438_s2 = sld [smem:[#allocation10 + $0x7]] }
  0x43   :  { %v269_v62 = vmax.f32 %v267_v41, 0.0  ;;  %v189_v63 = vadd.f32 %v187_v53, %v161_v49  ;;  %v190_v4 = vadd.f32 %v188_v54, %v162_v50  ;;  %v319_v5 = vadd.f32 %v317_v47, %v314_v31 }
  0x44   :  { %v320_v6 = vadd.f32 %v318_v32, %v315_v42  ;;  %v243_v7 = vmul.f32 %v242_v61, %v240_v44  ;;  %v244_v10 = vmul.f32 %v242_v61, %v241_v45  ;;  %v270_v11 = vstv %s783_s21 }
  0x45   :  { %v321_v12 = vstv %s762_s16  ;;  %v217_v13 = vadd.f32 %v215_v57, %v189_v63  ;;  %v218_v14 = vadd.f32 %v216_v58, %v190_v4  ;;  %v296_v16 = vmax.f32 %v294_v46, 0.0 }
  0x46   :  { %v271_v17 = vmul.f32 %v270_v11, %v268_v56  ;;  %v297_v18 = vmax.f32 %v295_v52, 0.0  ;;  %v298_v20 = vstv %s786_s22  ;;  %v332_v21 = vmul.f32 %v331_v26, %v598_v0 }
  0x47   :  { %v272_v22 = vmul.f32 %v270_v11, %v269_v62  ;;  %v322_v23 = vadd.f32 %v321_v12, %v319_v5  ;;  %v323_v24 = vadd.f32 %v321_v12, %v320_v6  ;;  %v333_v25 = vmul.f32 %v331_v26, %v600_v1 }
  0x48   :  { %v245_v27 = vadd.f32 %v243_v7, %v217_v13  ;;  %v246_v28 = vadd.f32 %v244_v10, %v218_v14  ;;  %v334_v29 = vstv %s788_s23  ;;  %v339_v47 = vstv %s791_s24 }
  0x49   :  { %v335_v48 = vmul.f32 %v334_v29, %v604_v2  ;;  %v336_v30 = vmul.f32 %v334_v29, %v606_v3  ;;  %v299_v31 = vmul.f32 %v298_v20, %v296_v16  ;;  %v300_v0 = vmul.f32 %v298_v20, %v297_v18 }
  0x4a   :  { %v340_v32 = vmul.f32 %v339_v47, %v614_v8  ;;  %v341_v59 = vmul.f32 %v339_v47, %v616_v9  ;;  %v324_v60 = vmax.f32 %v322_v23, 0.0  ;;  %v325_v1 = vmax.f32 %v323_v24, 0.0 }
  0x4b   :  { %v337_v26 = vadd.f32 %v335_v48, %v332_v21  ;;  %v338_v33 = vadd.f32 %v336_v30, %v333_v25  ;;  %v273_v34 = vadd.f32 %v271_v17, %v245_v27  ;;  %v274_v35 = vadd.f32 %v272_v22, %v246_v28 }
  0x4c   :  { %v326_v36 = vstv %s798_s26  ;;  %v344_v37 = vstv %s796_s25  ;;  %v349_v41 = vstv %s806_s29  ;;  %v354_v49 = vstv %s438_s2 }
  0x4d   :  { %v342_v38 = vadd.f32 %v340_v32, %v337_v26  ;;  %v343_v2 = vadd.f32 %v341_v59, %v338_v33  ;;  %v345_v3 = vmul.f32 %v344_v37, %v628_v15  ;;  %v346_v39 = vmul.f32 %v344_v37, %v633_v19 }
  0x4e   :  { %v327_v40 = vmul.f32 %v326_v36, %v324_v60  ;;  %v328_v8 = vmul.f32 %v326_v36, %v325_v1  ;;  %v301_v9 = vadd.f32 %v299_v31, %v273_v34  ;;  %v302_v42 = vadd.f32 %v300_v0, %v274_v35 }
  0x4f   :  { %v347_v43 = vadd.f32 %v345_v3, %v342_v38  ;;  %v348_v44 = vadd.f32 %v346_v39, %v343_v2  ;;  %v359_v15 = vstv %s835_s4 }
  0x50   :  { %v329_v50 = vadd.f32 %v327_v40, %v301_v9  ;;  %v330_v51 = vadd.f32 %v328_v8, %v302_v42 }
  0x51   :  { %v350_v45 = vadd.f32 %v349_v41, %v347_v43  ;;  %v351_v46 = vadd.f32 %v349_v41, %v348_v44 }
  0x53   :  { %v352_v52 = vmax.f32 %v350_v45, 0.0  ;;  %v353_v53 = vmax.f32 %v351_v46, 0.0 }
  0x55   :  { %v355_v54 = vmul.f32 %v354_v49, %v352_v52  ;;  %v356_v55 = vmul.f32 %v354_v49, %v353_v53 }
  0x57   :  { %v357_v19 = vadd.f32 %v355_v54, %v329_v50  ;;  %v358_v56 = vadd.f32 %v356_v55, %v330_v51 }
  0x59   :  { %v360_v57 = vadd.f32 %v359_v15, %v357_v19  ;;  %v361_v58 = vadd.f32 %v359_v15, %v358_v56 }
  0x5b   :  { %446 = vtanh.f32 %v360_v57 }
  0x5c   :  { %448 = vtanh.f32 %v361_v58 }
  0x61   :  { %v447_v61 = vpop.eup %446 }
  0x62   :  { %v449_v62 = vpop.eup %448  ;;  %v364_v63 = vmul.f32 0.5, %v447_v61 }
  0x63   :  { %v365_v4 = vmul.f32 0.5, %v449_v62 }
  0x64   :  { %v366_v5 = vadd.f32 0.5, %v364_v63 }
  0x65   :  { %v367_v6 = vadd.f32 0.5, %v365_v4 }
  0x66   :  { %368 = vst [vmem:[#allocation11] sm:$0xff] %v366_v5 }
  0x67   :  { %369 = vst [vmem:[#allocation11 + $0x8] sm:$0xff] %v367_v6 }
  0x68   :  { %382 = dma.vmem_to_hbm [thread:$0]  %s375_s0, 256, %s377_s10, [#allocation5], %s544_s27, %s544_s27, %s545_s28  }
  0x69   :  { %540 = dma.done.wait [#allocation5], 256  }
  0x6a   :  { %541 = vsyncadd [#allocation5], 4294967040 }
  0x6b   :  { %387 = vsyncpa [#allocation4], 1 }
  0x6c   :  { %388 = vsyncpa [#allocation5], 1 }
  0x6d   :  { %389 = vsyncpa [#allocation6], 1 }
  0x6e   :  { %390 = vsyncpa [#allocation9], 1 }

</bundles_post_ra>
